<compile_context>
chip_gen: v6e
topology: v6e:2x2x1
jax: 0.10.0
libtpu: 0.0.40
codegen_flags: <defaults>
</compile_context>

<pallas_src>
import functools

import jax
import jax.numpy as jnp
from jax import lax
from jax.experimental import pallas as pl
from jax.experimental.pallas import tpu as pltpu

BN_EPS = 1e-5
LANE = 128
_VMEM_LIMIT = 32 * 1024 * 1024  # > v5e's 16 MiB scoped default; safe on v6e/v7x


def _round_up(x, m):
    return (x + m - 1) // m * m


def _pick_row_tile(n):
    """Largest row tile (multiple of 8, >=256 preferred for the v6e/v7x MXU)
    that divides n, preferring at least 2 grid steps so the pipeline runs."""
    for t in (512, 256, 128, 64, 32, 16, 8):
        if n % t == 0 and n // t >= 2:
            return t
    for t in (512, 256, 128, 64, 32, 16, 8):
        if n % t == 0:
            return t
    return n


def _conv_gates_kernel(p_ref, w_ref, b_ref, gates_ref, stats_ref):
    """One row tile: gates = patches @ W + b (single MXU matmul, f32 acc),
    plus the per-tile partial sums needed for train-mode BatchNorm stats."""
    gates = jnp.dot(p_ref[...], w_ref[...], preferred_element_type=jnp.float32)
    gates = gates + b_ref[...]                              # (tm, Cgp) f32
    gates_ref[...] = gates
    s0 = jnp.sum(gates, axis=0, keepdims=True)              # (1, Cgp)
    s1 = jnp.sum(gates * gates, axis=0, keepdims=True)      # (1, Cgp)
    stats_ref[...] = jnp.concatenate([s0, s1], axis=0)[None]  # (1, 2, Cgp)


def _lstm_update_kernel(*refs, Ch, residual):
    """BN (pre-folded into scale/shift) + gate activations + LSTM state update."""
    if residual:
        gates_ref, scale_ref, shift_ref, c_ref, x_ref, h_out_ref, c_out_ref = refs
    else:
        gates_ref, scale_ref, shift_ref, c_ref, h_out_ref, c_out_ref = refs
    gn = gates_ref[...] * scale_ref[...] + shift_ref[...]   # (tm, Cgp), f32
    # Full 128-lane EUP passes; per-gate blocks are sliced afterwards.
    sig = jax.nn.sigmoid(gn)
    th = jnp.tanh(gn)
    i = sig[:, 0 * Ch:1 * Ch]
    f = sig[:, 1 * Ch:2 * Ch]
    g = th[:, 2 * Ch:3 * Ch]
    o = sig[:, 3 * Ch:4 * Ch]
    c_next = f * c_ref[...] + i * g
    h_next = o * jnp.tanh(c_next)
    if residual:  # only when input_dim == hidden_dim (static)
        h_next = h_next + x_ref[...]
    h_out_ref[...] = h_next
    c_out_ref[...] = c_next


def enhanced_convlstm_cell(x_nchw, h_nchw, c_nchw, params, kernel_size=3,
                           matmul_dtype=jnp.bfloat16):
    """Wrapper: NCHW (PyTorch) in/out; im2col + lane-dense padding inside."""
    B, Cin, H, W = x_nchw.shape
    Ch = h_nchw.shape[1]
    K = kernel_size
    pad = K // 2
    Cc = Cin + Ch
    N = B * H * W
    Cg = 4 * Ch
    Cgp = _round_up(Cg, LANE)          # padded gate channels (lane dense)
    KKC = K * K * Cc
    KKCp = _round_up(KKC, LANE)        # padded contraction depth (lane dense)

    x = jnp.transpose(x_nchw, (0, 2, 3, 1)).astype(jnp.float32)
    h = jnp.transpose(h_nchw, (0, 2, 3, 1)).astype(jnp.float32)
    c = jnp.transpose(c_nchw, (0, 2, 3, 1)).astype(jnp.float32)

    # im2col patch matrix, (N, K*K*Cc), padded to a multiple of 128 lanes.
    # TODO(synk): for large H*W build the patches in-kernel from a halo'd
    # spatial block to avoid K*K-fold activation HBM traffic.
    combined = jnp.concatenate([x, h], axis=-1)                 # (B,H,W,Cc)
    comb_pad = jnp.pad(combined, ((0, 0), (pad, pad), (pad, pad), (0, 0)))
    patches = jnp.concatenate(
        [comb_pad[:, dy:dy + H, dx:dx + W, :]
         for dy in range(K) for dx in range(K)], axis=-1).reshape(N, KKC)
    patches = jnp.pad(patches, ((0, 0), (0, KKCp - KKC))).astype(matmul_dtype)

    # Weights HWIO (K,K,Cc,4Ch) -> (K*K*Cc, 4Ch), zero-padded, same matmul dtype.
    w = params["conv_w"].astype(jnp.float32).reshape(KKC, Cg)
    w = jnp.pad(w, ((0, KKCp - KKC), (0, Cgp - Cg))).astype(matmul_dtype)
    b = jnp.pad(params["conv_b"].astype(jnp.float32), (0, Cgp - Cg)).reshape(1, Cgp)
    gamma = jnp.pad(params["bn_gamma"].astype(jnp.float32), (0, Cgp - Cg))
    beta = jnp.pad(params["bn_beta"].astype(jnp.float32), (0, Cgp - Cg))

    tm = _pick_row_tile(N)
    n_tiles = N // tm
    cp = pltpu.CompilerParams(dimension_semantics=("parallel",),
                              vmem_limit_bytes=_VMEM_LIMIT)

    # ---- pass 1: conv gates + per-tile BN partial statistics -------------
    gates, stats = pl.pallas_call(
        _conv_gates_kernel,
        grid=(n_tiles,),
        in_specs=[pl.BlockSpec((tm, KKCp), lambda i: (i, 0)),
                  pl.BlockSpec((KKCp, Cgp), lambda i: (0, 0)),
                  pl.BlockSpec((1, Cgp), lambda i: (0, 0))],
        out_specs=(pl.BlockSpec((tm, Cgp), lambda i: (i, 0)),
                   pl.BlockSpec((1, 2, Cgp), lambda i: (i, 0, 0))),
        out_shape=(jax.ShapeDtypeStruct((N, Cgp), jnp.float32),
                   jax.ShapeDtypeStruct((n_tiles, 2, Cgp), jnp.float32)),
        compiler_params=cp,
    )(patches, w, b)

    # Fold train-mode BN (full-batch mean, biased variance) into one affine.
    # The cross-tile reduction is tiny (n_tiles x 2 x Cgp) and stays in XLA.
    sums = jnp.sum(stats, axis=0)                       # (2, Cgp)
    mean = sums[0] / N
    var = jnp.maximum(sums[1] / N - mean * mean, 0.0)
    inv = lax.rsqrt(var + BN_EPS)
    scale = (gamma * inv).reshape(1, Cgp)
    shift = (beta - mean * gamma * inv).reshape(1, Cgp)

    # ---- pass 2: BN + gate activations + LSTM state update ---------------
    residual = (Cin == Ch)
    kern = functools.partial(_lstm_update_kernel, Ch=Ch, residual=residual)
    c_flat = c.reshape(N, Ch)

    in_specs = [pl.BlockSpec((tm, Cgp), lambda i: (i, 0)),
                pl.BlockSpec((1, Cgp), lambda i: (0, 0)),
                pl.BlockSpec((1, Cgp), lambda i: (0, 0)),
                pl.BlockSpec((tm, Ch), lambda i: (i, 0))]
    args = [gates, scale, shift, c_flat]
    if residual:
        in_specs.append(pl.BlockSpec((tm, Ch), lambda i: (i, 0)))
        args.append(x.reshape(N, Cin))

    h_flat, c_next_flat = pl.pallas_call(
        kern,
        grid=(n_tiles,),
        in_specs=in_specs,
        out_specs=(pl.BlockSpec((tm, Ch), lambda i: (i, 0)),
                   pl.BlockSpec((tm, Ch), lambda i: (i, 0))),
        out_shape=(jax.ShapeDtypeStruct((N, Ch), jnp.float32),
                   jax.ShapeDtypeStruct((N, Ch), jnp.float32)),
        compiler_params=cp,
    )(*args)

    h_next = jnp.transpose(h_flat.reshape(B, H, W, Ch), (0, 3, 1, 2))
    c_next = jnp.transpose(c_next_flat.reshape(B, H, W, Ch), (0, 3, 1, 2))
    return h_next, c_next


def reference_convlstm_cell(x_nchw, h_nchw, c_nchw, params, kernel_size=3):
    """Pure-JAX reference of the PyTorch forward (for correctness check)."""
    B, Cin, H, W = x_nchw.shape
    Ch = h_nchw.shape[1]
    x = jnp.transpose(x_nchw, (0, 2, 3, 1)).astype(jnp.float32)
    h = jnp.transpose(h_nchw, (0, 2, 3, 1)).astype(jnp.float32)
    c = jnp.transpose(c_nchw, (0, 2, 3, 1)).astype(jnp.float32)
    combined = jnp.concatenate([x, h], axis=-1)
    gates = lax.conv_general_dilated(
        combined, params["conv_w"].astype(jnp.float32),
        window_strides=(1, 1), padding="SAME",
        dimension_numbers=("NHWC", "HWIO", "NHWC"))
    gates = gates + params["conv_b"].reshape(1, 1, 1, 4 * Ch)
    mean = jnp.mean(gates, axis=(0, 1, 2), keepdims=True)
    var = jnp.mean((gates - mean) ** 2, axis=(0, 1, 2), keepdims=True)
    gn = (gates - mean) * lax.rsqrt(var + BN_EPS)
    gn = gn * params["bn_gamma"].reshape(1, 1, 1, -1) \
        + params["bn_beta"].reshape(1, 1, 1, -1)
    i = jax.nn.sigmoid(gn[..., 0 * Ch:1 * Ch])
    f = jax.nn.sigmoid(gn[..., 1 * Ch:2 * Ch])
    g = jnp.tanh(gn[..., 2 * Ch:3 * Ch])
    o = jax.nn.sigmoid(gn[..., 3 * Ch:4 * Ch])
    c_next = f * c + i * g
    h_next = o * jnp.tanh(c_next)
    if Cin == Ch:
        h_next = h_next + x
    return (jnp.transpose(h_next, (0, 3, 1, 2)),
            jnp.transpose(c_next, (0, 3, 1, 2)))


def _run_case(B, Cin, Ch, H, W, K, matmul_dtype, atol, rtol):
    Cc = Cin + Ch
    key = jax.random.PRNGKey(0)
    keys = jax.random.split(key, 7)
    x = jax.random.normal(keys[0], (B, Cin, H, W), jnp.float32)
    h_cur = jax.random.normal(keys[1], (B, Ch, H, W), jnp.float32)
    c_cur = jax.random.normal(keys[2], (B, Ch, H, W), jnp.float32)
    params = {
        "conv_w": 0.1 * jax.random.normal(keys[3], (K, K, Cc, 4 * Ch),
                                          jnp.float32),
        "conv_b": 0.01 * jax.random.normal(keys[4], (4 * Ch,), jnp.float32),
        "bn_gamma": 1.0 + 0.1 * jax.random.normal(keys[5], (4 * Ch,),
                                                  jnp.float32),
        "bn_beta": 0.1 * jax.random.normal(keys[6], (4 * Ch,), jnp.float32),
    }
    h_next, c_next = enhanced_convlstm_cell(x, h_cur, c_cur, params, K,
                                            matmul_dtype=matmul_dtype)
    jax.block_until_ready((h_next, c_next))
    h_ref, c_ref = reference_convlstm_cell(x, h_cur, c_cur, params, K)
    assert h_next.shape == (B, Ch, H, W) and c_next.shape == (B, Ch, H, W)
    assert jnp.allclose(h_next, h_ref, atol=atol, rtol=rtol), \
        f"h mismatch: max err {jnp.max(jnp.abs(h_next - h_ref))}"
    assert jnp.allclose(c_next, c_ref, atol=atol, rtol=rtol), \
        f"c mismatch: max err {jnp.max(jnp.abs(c_next - c_ref))}"


if __name__ == "__main__":
    # bf16 MXU-operand path (perf default); tolerance sized for bf16 inputs
    # with f32 accumulation.
    _run_case(B=2, Cin=4, Ch=32, H=16, W=16, K=3,
              matmul_dtype=jnp.bfloat16, atol=2e-2, rtol=2e-2)
    # f32 matmul path: tight check of kernel structure / BN / gate math.
    _run_case(B=2, Cin=4, Ch=32, H=16, W=16, K=3,
              matmul_dtype=jnp.float32, atol=2e-4, rtol=2e-4)
    # Residual branch (input_dim == hidden_dim).
    _run_case(B=2, Cin=32, Ch=32, H=16, W=16, K=3,
              matmul_dtype=jnp.float32, atol=2e-4, rtol=2e-4)
    print("KERNEL_OK")
</pallas_src>

<mosaic_0001>
module attributes {stable_mosaic.version = 11 : i64} {
  func.func @_conv_gates_kernel(%arg0: i32, %arg1: memref<256x384xbf16, #tpu.memory_space<vmem>>, %arg2: memref<384x128xbf16, #tpu.memory_space<vmem>>, %arg3: memref<1x128xf32, #tpu.memory_space<vmem>>, %arg4: memref<256x128xf32, #tpu.memory_space<vmem>>, %arg5: memref<1x2x128xf32, #tpu.memory_space<vmem>>) attributes {dimension_semantics = [#tpu.dimension_semantics<parallel>], iteration_bounds = array<i64: 2>, scalar_prefetch = 0 : i64, scratch_operands = 0 : i64, tpu.core_type = #tpu.core_type<tc>, window_params = [{transform_indices = @transform_0, window_bounds = array<i64: 256, 384>}, {pipeline_mode = #tpu.pipeline_mode<synchronous>, transform_indices = @transform_1, window_bounds = array<i64: 384, 128>}, {pipeline_mode = #tpu.pipeline_mode<synchronous>, transform_indices = @transform_2, window_bounds = array<i64: 1, 128>}, {transform_indices = @transform_3, window_bounds = array<i64: 256, 128>}, {transform_indices = @transform_4, window_bounds = array<i64: 1, 2, 128>}]} {
    %c0 = arith.constant 0 : index
    %c0_0 = arith.constant 0 : index
    %0 = vector.load %arg1[%c0, %c0_0] : memref<256x384xbf16, #tpu.memory_space<vmem>>, vector<256x384xbf16>
    %c0_1 = arith.constant 0 : index
    %c0_2 = arith.constant 0 : index
    %1 = vector.load %arg2[%c0_1, %c0_2] : memref<384x128xbf16, #tpu.memory_space<vmem>>, vector<384x128xbf16>
    %cst = arith.constant dense<0.000000e+00> : vector<256x128xf32>
    %2 = tpu.matmul %0, %1, %cst {dimension_numbers = #tpu.dot_dimension_numbers<[1], [0], [0], [1], [0, 0, 1, 1], [], []>} : vector<256x384xbf16>, vector<384x128xbf16>, vector<256x128xf32> -> vector<256x128xf32>
    %c0_3 = arith.constant 0 : index
    %c0_4 = arith.constant 0 : index
    %3 = vector.load %arg3[%c0_3, %c0_4] : memref<1x128xf32, #tpu.memory_space<vmem>>, vector<1x128xf32>
    %4 = vector.broadcast %3 : vector<1x128xf32> to vector<256x128xf32>
    %5 = arith.addf %2, %4 : vector<256x128xf32>
    %c0_5 = arith.constant 0 : index
    %c0_6 = arith.constant 0 : index
    %6 = vector.load %arg4[%c0_5, %c0_6] : memref<256x128xf32, #tpu.memory_space<vmem>>, vector<256x128xf32>
    tpu.vector_store %arg4[%c0_5, %c0_6], %5 {strides = array<i32>} : memref<256x128xf32, #tpu.memory_space<vmem>>, vector<256x128xf32>,
    %cst_7 = arith.constant dense<0.000000e+00> : vector<128xf32>
    %7 = vector.multi_reduction <add>, %5, %cst_7 [0] : vector<256x128xf32> to vector<128xf32>
    %8 = vector.shape_cast %7 : vector<128xf32> to vector<1x128xf32>
    %9 = arith.mulf %5, %5 : vector<256x128xf32>
    %cst_8 = arith.constant dense<0.000000e+00> : vector<128xf32>
    %10 = vector.multi_reduction <add>, %9, %cst_8 [0] : vector<256x128xf32> to vector<128xf32>
    %11 = vector.shape_cast %10 : vector<128xf32> to vector<1x128xf32>
    %12 = tpu.concatenate %8, %11 in 0 : vector<1x128xf32>, vector<1x128xf32> -> vector<2x128xf32>
    %13 = vector.shape_cast %12 : vector<2x128xf32> to vector<1x2x128xf32>
    %c0_9 = arith.constant 0 : index
    %c0_10 = arith.constant 0 : index
    %c0_11 = arith.constant 0 : index
    %14 = vector.load %arg5[%c0_9, %c0_10, %c0_11] : memref<1x2x128xf32, #tpu.memory_space<vmem>>, vector<1x2x128xf32>
    tpu.vector_store %arg5[%c0_9, %c0_10, %c0_11], %13 {strides = array<i32>} : memref<1x2x128xf32, #tpu.memory_space<vmem>>, vector<1x2x128xf32>,
    return
  }
  func.func @transform_0(%arg0: i32) -> (i32, i32) {
    %c0_i32 = arith.constant 0 : i32
    %c0_i32_0 = arith.constant 0 : i32
    return %arg0, %c0_i32 : i32, i32
  }
  func.func @transform_1(%arg0: i32) -> (i32, i32) {
    %c0_i32 = arith.constant 0 : i32
    %c0_i32_0 = arith.constant 0 : i32
    %c0_i32_1 = arith.constant 0 : i32
    return %c0_i32, %c0_i32_0 : i32, i32
  }
  func.func @transform_2(%arg0: i32) -> (i32, i32) {
    %c0_i32 = arith.constant 0 : i32
    %c0_i32_0 = arith.constant 0 : i32
    %c0_i32_1 = arith.constant 0 : i32
    return %c0_i32, %c0_i32_0 : i32, i32
  }
  func.func @transform_3(%arg0: i32) -> (i32, i32) {
    %c0_i32 = arith.constant 0 : i32
    %c0_i32_0 = arith.constant 0 : i32
    return %arg0, %c0_i32 : i32, i32
  }
  func.func @transform_4(%arg0: i32) -> (i32, i32, i32) {
    %c0_i32 = arith.constant 0 : i32
    %c0_i32_0 = arith.constant 0 : i32
    %c0_i32_1 = arith.constant 0 : i32
    return %arg0, %c0_i32, %c0_i32_0 : i32, i32, i32
  }
}

</mosaic_0001>

<bundles_post_ra>
// kernel: tpu_custom_call.1
= control target key start
LH: loop header
LB: loop body
LE: loop exit
PB: predicated region body
PF: predicated region fallthrough
CT: control target
= control target key end

     0   :  { %10 = vsyncpa [#allocation3], 0  ;;  %s2417_s0 = inlined_call_operand.hbm [shape: bf16[512,384], index: 0, kind: input, shape index: {}]   ;;  %s2418_s1 = inlined_call_operand.hbm [shape: bf16[384,128], index: 1, kind: input, shape index: {}]   ;;  %s2419_s2 = inlined_call_operand.vmem [shape: f32[1,128], index: 2, kind: input, shape index: {}]   ;;  %s2420_s3 = inlined_call_operand.hbm [shape: f32[512,128], index: 3, kind: output, shape index: {0}]   ;;  %s2421_s4 = inlined_call_operand.hbm [shape: f32[2,2,128], index: 4, kind: output, shape index: {1}]  }
   0x1   :  { %12 = vsyncpa [#allocation3 + $0x1], 0 }
   0x2   :  { %13 = vsyncpa [#allocation6], 0 }
   0x3   :  { %14 = vsyncpa [#allocation4], 0 }
   0x4   :  { %16 = vsyncpa [#allocation4 + $0x1], 0 }
   0x5   :  { %17 = vsyncpa [#allocation9], 0 }
   0x6   :  { %19 = vsyncpa [#allocation9 + $0x1], 0  ;;  %s2015_s15 = smov 0   ;;  %s2017_s16 = smov 0  }
   0x7   :  { %s2019_s17 = smov 0   ;;  %s2021_s18 = smov 0  }
   0x8 LB: > { %s2036_s19 = sadd.s32 4294967295, %s1978_s18   ;;  %s1375_s20 = sadd.s32 4294967294, %s1978_s18   ;;  %s1978_s18 = sphi %s2021_s18, %s2443_s18   ;;  %s1974_s17 = sphi %s2019_s17, %s2442_s17   ;;  %s1970_s16 = sphi %s2017_s16, %s2441_s16   ;;  %s1966_s15 = sphi %s2015_s15, %s2440_s15  }
   0x9   : > { %p45_p0 = scmp.ne.s32.totalorder %s1970_s16, %s1966_s15  ;;  %p2422_p1 = scmp.eq.s32.totalorder %s2036_s19, 0 }
   0xa   : > { %p117_p3 = scmp.eq.s32.totalorder %s1375_s20, 1  ;;  %p1376_p5 = scmp.ge.s32.totalorder %s1978_s18, 1 }
   0xb   : > { %p2045_p4 = por %p2422_p1, %p45_p0  ;;  %p150_p7 = scmp.lt.s32.totalorder %s1978_s18, 3 }
   0xc   : > { %p2050_p6 = por %p117_p3, %p45_p0  ;;  %s1980_s24 = smov [#allocation5]  }
   0xd   : > { %s2426_s21 = scalar_select %p2045_p4, 1, 0 }
   0xe   : > { %s2427_s22 = scalar_select %p2050_p6, 1, 0 }
   0xf   : > { %p2055_p8 = pnand %p1376_p5, %p150_p7  ;;  %s162_s25 = sshll.u32 %s1980_s24, 4  ;;  %s163_s25 = int_to_ptr.vmem [resolvable:$true] %s162_s25 }
  0x10   : > { %s2069_s27 = sadd.s32 1, %s1978_s18   ;;  %s32_s28 = sadd.s32 1, %s1974_s17 }
  0x11   : > { %s2428_s23 = scalar_select %p2055_p8, 1, 0 }
  0x12   : > { %p1680_p9 = pneg %p2055_p8  ;;  %s29_s29 = ssub.s32 %s1978_s18, %s2069_s27 }
  0x13   : > { %s1837_s30 = scalar_lea.vmem %s163_s25, 3072  ;;  %p1845_p5 = scmp.lt.s32.totalorder %s163_s25, %s163_s25 }
  0x14   : > { %p2064_p11 = pnand %p1680_p9, %p2422_p1  ;;  %p1838_p13 = scmp.ne.s32.totalorder %s163_s25, %s1837_s30 }
  0x15   : > { %p1846_p7 = scmp.lt.s32.totalorder %s1837_s30, %s1837_s30 }
  0x16   : > { %p1828_p12 = pneg %p2064_p11 }
  0x17   : > { %p1847_p10 = por %p1846_p7, %p1845_p5 }
  0x18   : > { %p1840_p0 = pnand %p1838_p13, %p1828_p12 }
  0x1a   : > { %p1841_p3 = pneg %p1840_p0 }
  0x1c   : > { %p1848_p2 = pnand %p1847_p10, %p1841_p3 }
  0x1e   : > { %1851 = shalt.err (!%p1848_p2)
}
  0x1f   : > { %s1981_s5 = smov 64   ;;  %s1982_s6 = smov 4  }
  0x20   : > { %1683 = dma.hbm_to_vmem [thread:$0]  (!%p2064_p11), %s2418_s1, 3072, %s163_s25, [#allocation6], %s1981_s5, %s1981_s5, %s1982_s6  }
  0x21   : > { %p30_p9 = scmp.eq.s32.totalorder %s29_s29, 0  ;;  %p39_p12 = scmp.ne.s32.totalorder %s1974_s17, %s1970_s16 }
  0x22   : > { %p40_p10 = scmp.eq.s32.totalorder %s1978_s18, 0  ;;  %p1696_p2 = scmp.lt.s32.totalorder %s1978_s18, 2 }
  0x23   : > { %s2086_s9 = scalar_select %p30_p9, %s1974_s17, %s32_s28  }
  0x24   : > { %p41_p13 = por %p40_p10, %p39_p12  ;;  %p2430_p0 = scmp.eq.s32.totalorder %s2036_s19, 1 }
  0x25   : > { %s179_s11 = sand.u32 1, %s1974_s17   ;;  %s1668_s12 = smul.u32 6144, %s1978_s18 }
  0x26   : > { %p2090_p3 = por %p2430_p0, %p39_p12  ;;  %s1667_s13 = smul.u32 384, %s179_s11 }
  0x27   : > { %s2099_s24 = scalar_lea.hbm %s2417_s0, %s1668_s12  ;;  %p2101_p11 = pnand %p1696_p2, %p41_p13 }
  0x28   : > { %s2431_s10 = scalar_select %p2090_p3, 1, 0 }
  0x29   : > { %s183_s26 = scalar_lea.vmem [#allocation2], %s1667_s13  ;;  %s2107_s29 = scalar_lea.sflag [#allocation3], %s179_s11 }
  0x2a   : > { %s191_s28 = sshll.u32 %s183_s26, 4  ;;  %s1852_s30 = scalar_lea.hbm %s2099_s24, 6144  ;;  %s2105_s28 = int_to_ptr.vmem [resolvable:$true] %s191_s28 }
  0x2b   : > { %p1853_p5 = scmp.ne.s32.totalorder %s2099_s24, %s1852_s30  ;;  %p1854_p7 = pneg %p2101_p11 }
  0x2c   : > { %s1857_s7 = scalar_lea.hbm %s2417_s0, 12288  ;;  %p1858_p10 = scmp.lt.s32.totalorder %s2099_s24, %s2417_s0 }
  0x2d   : > { %p1855_p9 = pnand %p1854_p7, %p1853_p5  ;;  %p1859_p2 = scmp.lt.s32.totalorder %s1857_s7, %s1852_s30 }
  0x2f   : > { %p1856_p12 = pneg %p1855_p9  ;;  %p1860_p13 = por %p1859_p2, %p1858_p10 }
  0x31   : > { %p1861_p0 = pnand %p1860_p13, %p1856_p12 }
  0x33   : > { %1864 = shalt.err (!%p1861_p0)
}
  0x34   : > { %s1865_s11 = scalar_lea.vmem %s2105_s28, 6144  ;;  %s1983_s13 = smov [#allocation2]  }
  0x35   : > { %p1866_p1 = scmp.ne.s32.totalorder %s2105_s28, %s1865_s11  ;;  %s1870_s14 = sshll.u32 %s1983_s13, 4  ;;  %s1871_s14 = int_to_ptr.vmem [resolvable:$false] %s1870_s14 }
  0x36   : > { %s1872_s20 = scalar_lea.vmem %s1871_s14, 12288  ;;  %p1873_p9 = scmp.lt.s32.totalorder %s2105_s28, %s1871_s14 }
  0x37   : > { %p1868_p6 = pnand %p1866_p1, %p1854_p7  ;;  %p1874_p3 = scmp.lt.s32.totalorder %s1872_s20, %s1865_s11 }
  0x39   : > { %p1869_p5 = pneg %p1868_p6  ;;  %p1875_p4 = por %p1874_p3, %p1873_p9 }
  0x3b   : > { %p1876_p8 = pnand %p1875_p4, %p1869_p5 }
  0x3d   : > { %1879 = shalt.err (!%p1876_p8)
}
  0x3e   : > { %s1984_s26 = smov 192   ;;  %s1985_s30 = smov 12  }
  0x3f   : > { %1687 = dma.hbm_to_vmem [thread:$0]  (!%p2101_p11), %s2099_s24, 6144, %s2105_s28, %s2107_s29, %s1984_s26, %s1984_s26, %s1985_s30  }
  0x40   : > { %p2433_p1 = scmp.ne.s32.totalorder %s2428_s23, 0 }
  0x41   : > { %s2131_s5 = sand.u32 (!%p2433_p1), 1, %s1970_s16   ;;  %p2434_p4 = scmp.ne.s32.totalorder (!%p2433_p1), %s2426_s21, 0 }
  0x42   : > { %203 = sbr.rel (%p2433_p1) target bundleno = 457 (0x1c9), region = 32  ;;  %s206_s7 = scalar_lea.sflag (!%p2433_p1), [#allocation3], %s2131_s5 }
  0x43   : > { %s1669_s6 = smul.u32 (!%p2433_p1), 384, %s2131_s5 }
  0x45   : > { %s2135_s8 = scalar_lea.vmem (!%p2433_p1), [#allocation2], %s1669_s6 }
  0x47   : > { %1949 = dma.done.wait (%p2434_p4), %s206_s7, 6144  }
  0x48   : > { %1951 = vsyncadd (%p2434_p4), %s206_s7, 4294961152  ;;  %p2435_p6 = scmp.eq.s32.totalorder %s2036_s19, 0 }
  0x4a   : > { %1953 = dma.done.wait (%p2435_p6), [#allocation6], 3072   ;;  %p2436_p8 = pmov %p2435_p6 }
  0x4b   : > { %v1738_v0 = vld [vmem:[#allocation5 + $0x78] sm:$0xff]   ;;  %v1740_v2 = vld [vmem:[#allocation5 + $0x70] sm:$0xff]   ;;  %v1742_v4 = vld [vmem:[#allocation5 + $0x68] sm:$0xff]   ;;  %s1384_s21 = sshll.u32 %s2131_s5, 8  ;;  %s1466_s28 = sshll.u32 %s2036_s19, 12 }
  0x4c   : > { %1955 = vsyncadd (%p2436_p8), [#allocation6], 4294964224  ;;  %v1739_v1 = vld [vmem:[#allocation5 + $0x38] sm:$0xff]   ;;  %1467 = vmatprep.subr.bf16.mxu0 %v1738_v0  ;;  %1651 = vmatprep.subr.bf16.mxu1 %v1738_v0  ;;  %v1741_v3 = vld [vmem:[#allocation5 + $0x30] sm:$0xff]   ;;  %s2221_s25 = scalar_lea.vmem [#allocation7], %s1384_s21  ;;  %s2325_s13 = scalar_lea.hbm %s2420_s3, %s1466_s28 }
  0x4d   : > { %1468 = vmatpush3.bf16.msra.mxu0 %v1739_v1  ;;  %1659 = vmatpush3.bf16.msra.mxu1 %v1739_v1  ;;  %v1743_v5 = vld [vmem:[#allocation5 + $0x28] sm:$0xff]   ;;  %v1744_v6 = vld [vmem:[#allocation5 + $0x60] sm:$0xff]   ;;  %v1746_v8 = vld [vmem:[#allocation5 + $0x58] sm:$0xff]   ;;  %s1247_s29 = sshll.u32 %s2221_s25, 4  ;;  %s1229_s14 = scalar_lea.sflag [#allocation4], %s2131_s5  ;;  %s2327_s29 = int_to_ptr.vmem [resolvable:$true] %s1247_s29 }
  0x4e   : > { %1469 = vmatprep.subr.bf16.mxu0 %v1740_v2  ;;  %1652 = vmatprep.subr.bf16.mxu1 %v1740_v2  ;;  %v1745_v7 = vld [vmem:[#allocation5 + $0x20] sm:$0xff]   ;;  %v1747_v9 = vld [vmem:[#allocation5 + $0x18] sm:$0xff]   ;;  %v1748_v10 = vld [vmem:[#allocation5 + $0x50] sm:$0xff]   ;;  %s1880_s20 = scalar_lea.vmem %s2327_s29, 4096  ;;  %p2437_p11 = scmp.ne.s32.totalorder %s2431_s10, 0 }
  0x4f   : > { %v1756_v11 = vld [vmem:[%s2135_s8 + $0x4] ss:$12 sps:$4 sm:$0xff]   ;;  %v1750_v14 = vld [vmem:[#allocation5 + $0x48] sm:$0xff]   ;;  %v1760_v18 = vld [vmem:[#allocation5 + $0xb8] sm:$0xff]   ;;  %p1881_p3 = scmp.ne.s32.totalorder %s2327_s29, %s1880_s20  ;;  %s1986_s26 = smov [#allocation7]  }
  0x50   : > { %v1759_v12 = vld [vmem:[%s2135_s8 + $0x124] ss:$12 sps:$4 sm:$0xff]   ;;  %797 = vmatprep.mubr.bf16.mxu0 %v1756_v11  ;;  %v1751_v15 = vld [vmem:[#allocation5 + $0x8] sm:$0xff]   ;;  %v1770_v28 = vld [vmem:[%s2135_s8 + $0x34] ss:$12 sps:$4 sm:$0xff]   ;;  %s1884_s30 = sshll.u32 %s1986_s26, 4  ;;  %s1885_s30 = int_to_ptr.vmem [resolvable:$false] %s1884_s30 }
  0x51   : > { %1470 = vmatpush3.bf16.msra.mxu0 %v1741_v3  ;;  %1660 = vmatpush3.bf16.msra.mxu1 %v1741_v3  ;;  %v1749_v13 = vld [vmem:[#allocation5 + $0x10] sm:$0xff]   ;;  %v1752_v16 = vld [vmem:[#allocation5 + $0x40] sm:$0xff]   ;;  %v1762_v21 = vld [vmem:[%s2135_s8 + $0x1c] ss:$12 sps:$4 sm:$0xff]   ;;  %p1882_p7 = pnand %p1881_p3, %p2437_p11  ;;  %s1886_s6 = scalar_lea.vmem %s1885_s30, 8192 }
  0x52   : > { %1471 = vmatprep.subr.bf16.mxu0 %v1742_v4  ;;  %1653 = vmatprep.subr.bf16.mxu1 %v1742_v4  ;;  %v1753_v17 = vld [vmem:[#allocation5] sm:$0xff]   ;;  %v1761_v22 = vld [vmem:[#allocation5 + $0xb0] sm:$0xff]   ;;  %v1764_v23 = vld [vmem:[%s2135_s8 + $0x13c] ss:$12 sps:$4 sm:$0xff]   ;;  %p1887_p10 = scmp.lt.s32.totalorder %s2327_s29, %s1885_s30  ;;  %p1888_p2 = scmp.lt.s32.totalorder %s1886_s6, %s1880_s20 }
  0x53   : > { %893 = vmatprep.mubr.bf16.mxu1 %v1759_v12  ;;  %v1754_v19 = vld [vmem:[%s2135_s8] ss:$12 sps:$4 sm:$0xff]   ;;  %v1766_v24 = vld [vmem:[%s2135_s8 + $0x18] ss:$12 sps:$4 sm:$0xff]   ;;  %v1774_v31 = vld [vmem:[%s2135_s8 + $0x30] ss:$12 sps:$4 sm:$0xff]   ;;  %p1883_p12 = pneg %p1882_p7 }
  0x54   : > { %v1757_v20 = vld [vmem:[%s2135_s8 + $0x120] ss:$12 sps:$4 sm:$0xff]   ;;  %v1767_v26 = vld [vmem:[%s2135_s8 + $0x138] ss:$12 sps:$4 sm:$0xff]   ;;  %v1775_v32 = vld [vmem:[%s2135_s8 + $0x150] ss:$12 sps:$4 sm:$0xff]   ;;  %p1889_p13 = por %p1888_p2, %p1887_p10 }
  0x55   : > { %1472 = vmatpush3.bf16.msra.mxu0 %v1743_v5  ;;  %1661 = vmatpush3.bf16.msra.mxu1 %v1743_v5  ;;  %v1768_v25 = vld [vmem:[#allocation5 + $0xa8] sm:$0xff]   ;;  %v1769_v27 = vld [vmem:[#allocation5 + $0xa0] sm:$0xff]   ;;  %v1776_v30 = vld [vmem:[#allocation5 + $0x98] sm:$0xff]  }
  0x56   : > { %1473 = vmatprep.subr.bf16.mxu0 %v1744_v6  ;;  %1654 = vmatprep.subr.bf16.mxu1 %v1744_v6  ;;  %v1772_v29 = vld [vmem:[%s2135_s8 + $0x154] ss:$12 sps:$4 sm:$0xff]   ;;  %v1778_v34 = vld [vmem:[%s2135_s8 + $0x4c] ss:$12 sps:$4 sm:$0xff]   ;;  %v1786_v39 = vld [vmem:[%s2135_s8 + $0x64] ss:$12 sps:$4 sm:$0xff]   ;;  %p1890_p0 = pnand %p1889_p13, %p1883_p12 }
  0x57   : > { %v1777_v33 = vld [vmem:[#allocation5 + $0x90] sm:$0xff]   ;;  %v1780_v35 = vld [vmem:[%s2135_s8 + $0x16c] ss:$12 sps:$4 sm:$0xff]   ;;  %v1785_v40 = vld [vmem:[#allocation5 + $0x80] sm:$0xff]  }
  0x58   : > { %v1784_v36 = vld [vmem:[#allocation5 + $0x88] sm:$0xff]   ;;  %v1793_v45 = vld [vmem:[%s2135_s8 + $0x38] ss:$12 sps:$4 sm:$0xff]   ;;  %v1795_v47 = vld [vmem:[%s2135_s8 + $0x50] ss:$12 sps:$4 sm:$0xff]  }
  0x59   : > { %1474 = vmatpush3.bf16.msra.mxu0 %v1745_v7  ;;  %1662 = vmatpush3.bf16.msra.mxu1 %v1745_v7  ;;  %v1782_v37 = vld [vmem:[%s2135_s8 + $0x48] ss:$12 sps:$4 sm:$0xff]   ;;  %v1789_v42 = vld [vmem:[%s2135_s8 + $0x60] ss:$12 sps:$4 sm:$0xff]   ;;  %v1794_v46 = vld [vmem:[%s2135_s8 + $0x78] ss:$12 sps:$4 sm:$0xff]  }
  0x5a   : > { %1475 = vmatprep.subr.bf16.mxu0 %v1746_v8  ;;  %1655 = vmatprep.subr.bf16.mxu1 %v1746_v8  ;;  %v1783_v38 = vld [vmem:[%s2135_s8 + $0x168] ss:$12 sps:$4 sm:$0xff]   ;;  %v1790_v43 = vld [vmem:[%s2135_s8 + $0x20] ss:$12 sps:$4 sm:$0xff]   ;;  %v1799_v50 = vld [vmem:[%s2135_s8 + $0x90] ss:$12 sps:$4 sm:$0xff]  }
  0x5b   : > { %v1788_v41 = vld [vmem:[%s2135_s8 + $0x8] ss:$12 sps:$4 sm:$0xff]   ;;  %v1800_v51 = vld [vmem:[%s2135_s8 + $0x80] ss:$12 sps:$4 sm:$0xff]   ;;  %v1803_v53 = vld [vmem:[%s2135_s8 + $0x98] ss:$12 sps:$4 sm:$0xff]  }
  0x5c   : > { %v1791_v44 = vld [vmem:[%s2135_s8 + $0x7c] ss:$12 sps:$4 sm:$0xff]   ;;  %v1796_v48 = vld [vmem:[%s2135_s8 + $0x94] ss:$12 sps:$4 sm:$0xff]   ;;  %v1801_v52 = vld [vmem:[%s2135_s8 + $0xac] ss:$12 sps:$4 sm:$0xff]  }
  0x5d   : > { %1476 = vmatpush3.bf16.msra.mxu0 %v1747_v9  ;;  %1663 = vmatpush3.bf16.msra.mxu1 %v1747_v9  ;;  %v1798_v49 = vld [vmem:[%s2135_s8 + $0x68] ss:$12 sps:$4 sm:$0xff]   ;;  %v1805_v55 = vld [vmem:[%s2135_s8 + $0xb0] ss:$12 sps:$4 sm:$0xff]   ;;  %v1809_v58 = vld [vmem:[%s2135_s8 + $0xc0] ss:$12 sps:$4 sm:$0xff]  }
  0x5e   : > { %1477 = vmatprep.subr.bf16.mxu0 %v1748_v10  ;;  %1656 = vmatprep.subr.bf16.mxu1 %v1748_v10  ;;  %v1804_v54 = vld [vmem:[%s2135_s8 + $0xa8] ss:$12 sps:$4 sm:$0xff]   ;;  %v1806_v56 = vld [vmem:[%s2135_s8 + $0xc4] ss:$12 sps:$4 sm:$0xff]   ;;  %v1810_v59 = vld [vmem:[%s2135_s8 + $0xe0] ss:$12 sps:$4 sm:$0xff]  }
  0x5f   : > { %v1808_v57 = vld [vmem:[%s2135_s8 + $0xc8] ss:$12 sps:$4 sm:$0xff]   ;;  %v1813_v61 = vld [vmem:[%s2135_s8 + $0xf8] ss:$12 sps:$4 sm:$0xff]   ;;  %v1815_v63 = vld [vmem:[%s2135_s8 + $0x110] ss:$12 sps:$4 sm:$0xff]  }
  0x60   : > { %v1811_v60 = vld [vmem:[%s2135_s8 + $0xdc] ss:$12 sps:$4 sm:$0xff]   ;;  %v1814_v62 = vld [vmem:[%s2135_s8 + $0xd8] ss:$12 sps:$4 sm:$0xff]   ;;  %v1816_v0 = vld [vmem:[%s2135_s8 + $0xf4] ss:$12 sps:$4 sm:$0xff]  }
  0x61   : > { %1478 = vmatpush3.bf16.msra.mxu0 %v1749_v13  ;;  %1664 = vmatpush3.bf16.msra.mxu1 %v1749_v13  ;;  %v1818_v1 = vld [vmem:[%s2135_s8 + $0x128] ss:$12 sps:$4 sm:$0xff]   ;;  %v1819_v2 = vld [vmem:[%s2135_s8 + $0xf0] ss:$12 sps:$4 sm:$0xff]   ;;  %v1820_v3 = vld [vmem:[%s2135_s8 + $0x140] ss:$12 sps:$4 sm:$0xff]  }
  0x62   : > { %1479 = vmatprep.subr.bf16.mxu0 %v1750_v14  ;;  %1657 = vmatprep.subr.bf16.mxu1 %v1750_v14  ;;  %v1821_v4 = vld [vmem:[%s2135_s8 + $0x10c] ss:$12 sps:$4 sm:$0xff]   ;;  %v1824_v6 = vld [vmem:[%s2135_s8 + $0x108] ss:$12 sps:$4 sm:$0xff]   ;;  %v1825_v7 = vld [vmem:[%s2135_s8 + $0x170] ss:$12 sps:$4 sm:$0xff]  }
  0x63   : > { %v1823_v5 = vld [vmem:[%s2135_s8 + $0x158] ss:$12 sps:$4 sm:$0xff]  }
  0x65   : > { %1480 = vmatpush3.bf16.msra.mxu0 %v1751_v15  ;;  %1665 = vmatpush3.bf16.msra.mxu1 %v1751_v15 }
  0x66   : > { %1481 = vmatprep.subr.bf16.mxu0 %v1752_v16  ;;  %1658 = vmatprep.subr.bf16.mxu1 %v1752_v16 }
  0x69   : > { %1482 = vmatpush3.bf16.msra.mxu0 %v1753_v17  ;;  %1666 = vmatpush3.bf16.msra.mxu1 %v1753_v17 }
  0x6a   : > { %1603 = vmatprep.subr.bf16.mxu1 %v1760_v18 }
  0x6c   : > { %798 = vmatmul.mubr.bf16.vlgmr.msra.gmra.mxu0 %v1754_v19  ;;  %894 = vmatmul.mubr.bf16.vlgmr.msra.gmra.mxu1 %v1757_v20 }
  0x6d   : > { %1604 = vmatpush3.bf16.msra.mxu1 %v1760_v18  ;;  %805 = vmatprep.mubr.bf16.mxu0 %v1762_v21 }
  0x6e   : > { %1605 = vmatprep.subr.bf16.mxu1 %v1761_v22  ;;  %901 = vmatprep.mubr.bf16.mxu1 %v1764_v23 }
  0x71   : > { %1606 = vmatpush3.bf16.msra.mxu1 %v1761_v22 }
  0x72   : > { %1607 = vmatprep.subr.bf16.mxu1 %v1768_v25 }
  0x74   : > { %806 = vmatmul.mubr.bf16.gmra.mxu0 %v1766_v24  ;;  %902 = vmatmul.mubr.bf16.gmra.mxu1 %v1767_v26 }
  0x75   : > { %1608 = vmatpush3.bf16.msra.mxu1 %v1768_v25  ;;  %813 = vmatprep.mubr.bf16.mxu0 %v1770_v28 }
  0x76   : > { %1609 = vmatprep.subr.bf16.mxu1 %v1769_v27  ;;  %909 = vmatprep.mubr.bf16.mxu1 %v1772_v29 }
  0x79   : > { %1610 = vmatpush3.bf16.msra.mxu1 %v1769_v27 }
  0x7a   : > { %1611 = vmatprep.subr.bf16.mxu1 %v1776_v30 }
  0x7c   : > { %814 = vmatmul.mubr.bf16.gmra.mxu0 %v1774_v31  ;;  %910 = vmatmul.mubr.bf16.gmra.mxu1 %v1775_v32 }
  0x7d   : > { %1612 = vmatpush3.bf16.msra.mxu1 %v1776_v30  ;;  %821 = vmatprep.mubr.bf16.mxu0 %v1778_v34 }
  0x7e   : > { %1613 = vmatprep.subr.bf16.mxu1 %v1777_v33  ;;  %917 = vmatprep.mubr.bf16.mxu1 %v1780_v35 }
  0x81   : > { %1614 = vmatpush3.bf16.msra.mxu1 %v1777_v33 }
  0x82   : > { %1615 = vmatprep.subr.bf16.mxu1 %v1784_v36 }
  0x84   : > { %822 = vmatmul.mubr.bf16.gmra.mxu0 %v1782_v37  ;;  %918 = vmatmul.mubr.bf16.gmra.mxu1 %v1783_v38 }
  0x85   : > { %1616 = vmatpush3.bf16.msra.mxu1 %v1784_v36  ;;  %829 = vmatprep.mubr.bf16.mxu0 %v1786_v39 }
  0x86   : > { %1617 = vmatprep.subr.bf16.mxu1 %v1785_v40  ;;  %1619 = vmatprep.mubr.bf16.mxu1 %v1788_v41 }
  0x89   : > { %1618 = vmatpush3.bf16.msra.mxu1 %v1785_v40 }
  0x8c   : > { %830 = vmatmul.mubr.bf16.gmra.mxu0 %v1789_v42  ;;  %1620 = vmatmul.mubr.bf16.vlgmr.msra.gmra.mxu1 %v1790_v43 }
  0x8d   : > { %837 = vmatprep.mubr.bf16.mxu0 %v1791_v44  ;;  %1623 = vmatprep.mubr.bf16.mxu1 %v1793_v45 }
  0x94   : > { %838 = vmatmul.mubr.bf16.gmra.mxu0 %v1794_v46  ;;  %1624 = vmatmul.mubr.bf16.gmra.mxu1 %v1795_v47 }
  0x95   : > { %845 = vmatprep.mubr.bf16.mxu0 %v1796_v48  ;;  %1627 = vmatprep.mubr.bf16.mxu1 %v1798_v49  ;;  %v2217_v48 = vld [vmem:[%s2419_s2] ss:$0 sm:$0xff] }
  0x9c   : > { %846 = vmatmul.mubr.bf16.gmra.mxu0 %v1799_v50  ;;  %1628 = vmatmul.mubr.bf16.gmra.mxu1 %v1800_v51 }
  0x9d   : > { %853 = vmatprep.mubr.bf16.mxu0 %v1801_v52  ;;  %1631 = vmatprep.mubr.bf16.mxu1 %v1803_v53 }
  0xa4   : > { %854 = vmatmul.mubr.bf16.gmra.mxu0 %v1804_v54  ;;  %1632 = vmatmul.mubr.bf16.gmra.mxu1 %v1805_v55 }
  0xa5   : > { %861 = vmatprep.mubr.bf16.mxu0 %v1806_v56  ;;  %1635 = vmatprep.mubr.bf16.mxu1 %v1808_v57 }
  0xac   : > { %862 = vmatmul.mubr.bf16.gmra.mxu0 %v1809_v58  ;;  %1636 = vmatmul.mubr.bf16.gmra.mxu1 %v1810_v59 }
  0xad   : > { %869 = vmatprep.mubr.bf16.mxu0 %v1811_v60  ;;  %1639 = vmatprep.mubr.bf16.mxu1 %v1813_v61 }
  0xb4   : > { %870 = vmatmul.mubr.bf16.gmra.mxu0 %v1814_v62  ;;  %1640 = vmatmul.mubr.bf16.gmra.mxu1 %v1815_v63 }
  0xb5   : > { %877 = vmatprep.mubr.bf16.mxu0 %v1816_v0  ;;  %1643 = vmatprep.mubr.bf16.mxu1 %v1818_v1 }
  0xbc   : > { %878 = vmatmul.mubr.bf16.gmra.mxu0 %v1819_v2  ;;  %1644 = vmatmul.mubr.bf16.gmra.mxu1 %v1820_v3 }
  0xbd   : > { %885 = vmatprep.mubr.bf16.mxu0 %v1821_v4  ;;  %1647 = vmatprep.mubr.bf16.mxu1 %v1823_v5 }
  0xc4   : > { %886 = vmatmul.mubr.bf16.gmra.mxu0 %v1824_v6  ;;  %1648 = vmatmul.mubr.bf16.gmra.mxu1 %v1825_v7 }
 0x12c   : > { %v1483_v8 = vpop.f32.mrf.mxu0  ;;  %v1555_v9 = vpop.f32.mrf.mxu1 }
 0x12e   : > { %v1484_v10 = vpop.f32.mrf.mxu0  ;;  %v1556_v11 = vpop.f32.mrf.mxu1 }
 0x12f   : > { %v2193_v12 = vadd.f32 %v1556_v11, %v1555_v9  ;;  %v1485_v45 = vadd.f32 %v1484_v10, %v1483_v8 }
 0x130   : > { %v1486_v13 = vpop.f32.mrf.mxu0  ;;  %v1558_v14 = vpop.f32.mrf.mxu1 }
 0x131   : > { %v800_v55 = vadd.f32 %v1485_v45, %v2217_v48 }
 0x132   : > { %v1487_v15 = vpop.f32.mrf.mxu0  ;;  %v1559_v16 = vpop.f32.mrf.mxu1 }
 0x133   : > { %v2195_v17 = vadd.f32 %v1559_v16, %v1558_v14  ;;  %v1488_v53 = vadd.f32 %v1487_v15, %v1486_v13 }
 0x134   : > { %v1489_v18 = vpop.f32.mrf.mxu0  ;;  %v1561_v19 = vpop.f32.mrf.mxu1 }
 0x135   : > { %v803_v0 = vadd.f32 %v1488_v53, %v2217_v48 }
 0x136   : > { %v1490_v20 = vpop.f32.mrf.mxu0  ;;  %v1562_v21 = vpop.f32.mrf.mxu1 }
 0x137   : > { %v2197_v22 = vadd.f32 %v1562_v21, %v1561_v19  ;;  %v1491_v42 = vadd.f32 %v1490_v20, %v1489_v18 }
 0x138   : > { %v1492_v23 = vpop.f32.mrf.mxu0  ;;  %v1564_v24 = vpop.f32.mrf.mxu1 }
 0x139   : > { %v808_v50 = vadd.f32 %v1491_v42, %v2217_v48 }
 0x13a   : > { %v1493_v25 = vpop.f32.mrf.mxu0  ;;  %v1565_v26 = vpop.f32.mrf.mxu1 }
 0x13b   : > { %v2199_v27 = vadd.f32 %v1565_v26, %v1564_v24  ;;  %v1494_v49 = vadd.f32 %v1493_v25, %v1492_v23 }
 0x13c   : > { %v1495_v28 = vpop.f32.mrf.mxu0  ;;  %v1567_v29 = vpop.f32.mrf.mxu1 }
 0x13d   : > { %v811_v60 = vadd.f32 %v1494_v49, %v2217_v48 }
 0x13e   : > { %v1496_v30 = vpop.f32.mrf.mxu0  ;;  %v1568_v31 = vpop.f32.mrf.mxu1 }
 0x13f   : > { %v2201_v32 = vadd.f32 %v1568_v31, %v1567_v29  ;;  %v1497_v1 = vadd.f32 %v1496_v30, %v1495_v28 }
 0x140   : > { %v1498_v33 = vpop.f32.mrf.mxu0  ;;  %v1570_v34 = vpop.f32.mrf.mxu1 }
 0x141   : > { %v816_v16 = vadd.f32 %v1497_v1, %v2217_v48 }
 0x142   : > { %v1499_v35 = vpop.f32.mrf.mxu0  ;;  %v1571_v36 = vpop.f32.mrf.mxu1 }
 0x143   : > { %v2203_v37 = vadd.f32 %v1571_v36, %v1570_v34  ;;  %v1500_v14 = vadd.f32 %v1499_v35, %v1498_v33 }
 0x144   : > { %v1501_v38 = vpop.f32.mrf.mxu0  ;;  %v2205_v39 = vpop.f32.mrf.mxu1 }
 0x145   : > { %v819_v36 = vadd.f32 %v1500_v14, %v2217_v48 }
 0x146   : > { %v1502_v40 = vpop.f32.mrf.mxu0  ;;  %v2207_v41 = vpop.f32.mrf.mxu1 }
 0x147   : > { %v1503_v58 = vadd.f32 %v1502_v40, %v1501_v38 }
 0x148   : > { %v1504_v43 = vpop.f32.mrf.mxu0  ;;  %v2209_v44 = vpop.f32.mrf.mxu1 }
 0x149   : > { %v824_v6 = vadd.f32 %v1503_v58, %v2217_v48 }
 0x14a   : > { %v1505_v46 = vpop.f32.mrf.mxu0  ;;  %v2212_v47 = vpop.f32.mrf.mxu1 }
 0x14b   : > { %v1506_v2 = vadd.f32 %v1505_v46, %v1504_v43 }
 0x14c   : > { %v1507_v51 = vpop.f32.mrf.mxu0  ;;  %v1621_v52 = vpop.f32.mrf.mxu1 }
 0x14d   : > { %v969_v54 = vadd.f32 %v1621_v52, %v808_v50  ;;  %v827_v19 = vadd.f32 %v1506_v2, %v2217_v48 }
 0x14e   : > { %v1508_v56 = vpop.f32.mrf.mxu0  ;;  %v960_v57 = vpop.f32.mrf.mxu1 }
 0x14f   : > { %1089 = vst [vmem:[%s2221_s25 + $0x10] sm:$0xff] %v969_v54  ;;  %v961_v59 = vadd.f32 %v960_v57, %v800_v55  ;;  %v1158_v20 = vmul.f32 %v969_v54, %v969_v54  ;;  %v1509_v25 = vadd.f32 %v1508_v56, %v1507_v51 }
 0x150   : > { %v1510_v61 = vpop.f32.mrf.mxu0  ;;  %v1622_v62 = vpop.f32.mrf.mxu1 }
 0x151   : > { %1087 = vst [vmem:[%s2221_s25] sm:$0xff] %v961_v59  ;;  %v972_v63 = vadd.f32 %v1622_v62, %v811_v60  ;;  %v1156_v9 = vmul.f32 %v961_v59, %v961_v59  ;;  %v832_v55 = vadd.f32 %v1509_v25, %v2217_v48 }
 0x152   : > { %v1511_v3 = vpop.f32.mrf.mxu0  ;;  %v963_v4 = vpop.f32.mrf.mxu1 }
 0x153   : > { %1090 = vst [vmem:[%s2221_s25 + $0x18] sm:$0xff] %v972_v63  ;;  %v964_v5 = vadd.f32 %v963_v4, %v803_v0  ;;  %v1159_v30 = vmul.f32 %v972_v63, %v972_v63  ;;  %v1512_v52 = vadd.f32 %v1511_v3, %v1510_v61 }
 0x154   : > { %v1513_v7 = vpop.f32.mrf.mxu0  ;;  %v1625_v8 = vpop.f32.mrf.mxu1 }
 0x155   : > { %1088 = vst [vmem:[%s2221_s25 + $0x8] sm:$0xff] %v964_v5  ;;  %v1119_v10 = vadd.f32 %v964_v5, %v961_v59  ;;  %v1157_v11 = vmul.f32 %v964_v5, %v964_v5  ;;  %v985_v13 = vadd.f32 %v1625_v8, %v824_v6  ;;  %v835_v5 = vadd.f32 %v1512_v52, %v2217_v48 }
 0x156   : > { %v1514_v15 = vpop.f32.mrf.mxu0  ;;  %v976_v18 = vpop.f32.mrf.mxu1 }
 0x157   : > { %v1120_v21 = vadd.f32 %v1119_v10, %v969_v54  ;;  %v1188_v23 = vadd.f32 %v1157_v11, %v1156_v9  ;;  %1093 = vst [vmem:[%s2221_s25 + $0x30] sm:$0xff] %v985_v13  ;;  %v1515_v24 = vadd.f32 %v1514_v15, %v1513_v7  ;;  %v977_v26 = vadd.f32 %v976_v18, %v816_v16 }
 0x158   : > { %v1516_v28 = vpop.f32.mrf.mxu0  ;;  %v1626_v29 = vpop.f32.mrf.mxu1 }
 0x159   : > { %v1189_v31 = vadd.f32 %v1188_v23, %v1158_v20  ;;  %v1121_v33 = vadd.f32 %v1120_v21, %v972_v63  ;;  %v988_v34 = vadd.f32 %v1626_v29, %v827_v19  ;;  %1091 = vst [vmem:[%s2221_s25 + $0x20] sm:$0xff] %v977_v26  ;;  %v840_v40 = vadd.f32 %v1515_v24, %v2217_v48 }
 0x15a   : > { %v1517_v35 = vpop.f32.mrf.mxu0  ;;  %v979_v38 = vpop.f32.mrf.mxu1  ;;  %v1160_v43 = vmul.f32 %v977_v26, %v977_v26  ;;  %v1162_v63 = vmul.f32 %v985_v13, %v985_v13 }
 0x15b   : > { %v1122_v42 = vadd.f32 %v1121_v33, %v977_v26  ;;  %v1190_v45 = vadd.f32 %v1189_v31, %v1159_v30  ;;  %1094 = vst [vmem:[%s2221_s25 + $0x38] sm:$0xff] %v988_v34  ;;  %v1518_v46 = vadd.f32 %v1517_v35, %v1516_v28  ;;  %v980_v49 = vadd.f32 %v979_v38, %v819_v36 }
 0x15c   : > { %v1519_v50 = vpop.f32.mrf.mxu0  ;;  %v1629_v51 = vpop.f32.mrf.mxu1  ;;  %v1163_v6 = vmul.f32 %v988_v34, %v988_v34 }
 0x15d   : > { %v1191_v53 = vadd.f32 %v1190_v45, %v1160_v43  ;;  %v1001_v54 = vadd.f32 %v1629_v51, %v840_v40  ;;  %1092 = vst [vmem:[%s2221_s25 + $0x28] sm:$0xff] %v980_v49  ;;  %v1123_v56 = vadd.f32 %v1122_v42, %v980_v49  ;;  %v1161_v57 = vmul.f32 %v980_v49, %v980_v49 }
 0x15e   : > { %v1520_v58 = vpop.f32.mrf.mxu0  ;;  %v992_v59 = vpop.f32.mrf.mxu1  ;;  %v843_v62 = vadd.f32 %v1518_v46, %v2217_v48 }
 0x15f   : > { %1097 = vst [vmem:[%s2221_s25 + $0x50] sm:$0xff] %v1001_v54  ;;  %v993_v60 = vadd.f32 %v992_v59, %v832_v55  ;;  %v1124_v0 = vadd.f32 %v1123_v56, %v985_v13  ;;  %v1192_v1 = vadd.f32 %v1191_v53, %v1161_v57  ;;  %v1521_v3 = vadd.f32 %v1520_v58, %v1519_v50 }
 0x160   : > { %v1522_v2 = vpop.f32.mrf.mxu0  ;;  %v1630_v61 = vpop.f32.mrf.mxu1  ;;  %v1166_v45 = vmul.f32 %v1001_v54, %v1001_v54 }
 0x161   : > { %1095 = vst [vmem:[%s2221_s25 + $0x40] sm:$0xff] %v993_v60  ;;  %v1004_v4 = vadd.f32 %v1630_v61, %v843_v62  ;;  %v1193_v7 = vadd.f32 %v1192_v1, %v1162_v63  ;;  %v1125_v8 = vadd.f32 %v1124_v0, %v988_v34  ;;  %v1164_v14 = vmul.f32 %v993_v60, %v993_v60 }
 0x162   : > { %v1523_v9 = vpop.f32.mrf.mxu0  ;;  %v995_v10 = vpop.f32.mrf.mxu1  ;;  %v848_v20 = vadd.f32 %v1521_v3, %v2217_v48 }
 0x163   : > { %1098 = vst [vmem:[%s2221_s25 + $0x58] sm:$0xff] %v1004_v4  ;;  %v996_v11 = vadd.f32 %v995_v10, %v835_v5  ;;  %v1194_v15 = vadd.f32 %v1193_v7, %v1163_v6  ;;  %v1126_v18 = vadd.f32 %v1125_v8, %v993_v60  ;;  %v1524_v19 = vadd.f32 %v1523_v9, %v1522_v2 }
 0x164   : > { %v1525_v16 = vpop.f32.mrf.mxu0  ;;  %v1633_v13 = vpop.f32.mrf.mxu1  ;;  %v1167_v58 = vmul.f32 %v1004_v4, %v1004_v4 }
 0x165   : > { %1096 = vst [vmem:[%s2221_s25 + $0x48] sm:$0xff] %v996_v11  ;;  %v1195_v21 = vadd.f32 %v1194_v15, %v1164_v14  ;;  %v1165_v23 = vmul.f32 %v996_v11, %v996_v11  ;;  %v1127_v31 = vadd.f32 %v1126_v18, %v996_v11  ;;  %v851_v34 = vadd.f32 %v1524_v19, %v2217_v48 }
 0x166   : > { %v1526_v24 = vpop.f32.mrf.mxu0  ;;  %v1008_v25 = vpop.f32.mrf.mxu1 }
 0x167   : > { %v1527_v26 = vadd.f32 %v1526_v24, %v1525_v16  ;;  %v1009_v28 = vadd.f32 %v1008_v25, %v848_v20  ;;  %v1196_v35 = vadd.f32 %v1195_v21, %v1165_v23  ;;  %v1128_v50 = vadd.f32 %v1127_v31, %v1001_v54 }
 0x168   : > { %v1528_v29 = vpop.f32.mrf.mxu0  ;;  %v1634_v30 = vpop.f32.mrf.mxu1 }
 0x169   : > { %v856_v33 = vadd.f32 %v1527_v26, %v2217_v48  ;;  %1099 = vst [vmem:[%s2221_s25 + $0x60] sm:$0xff] %v1009_v28  ;;  %v1197_v52 = vadd.f32 %v1196_v35, %v1166_v45  ;;  %v1129_v62 = vadd.f32 %v1128_v50, %v1004_v4  ;;  %v1168_v3 = vmul.f32 %v1009_v28, %v1009_v28 }
 0x16a   : > { %v1529_v36 = vpop.f32.mrf.mxu0  ;;  %v1011_v38 = vpop.f32.mrf.mxu1  ;;  %v904_v26 = vadd.f32 %v2197_v22, %v2217_v48  ;;  %v1575_v35 = vadd.f32 %v2207_v41, %v2205_v39 }
 0x16b   : > { %v1017_v40 = vadd.f32 %v1633_v13, %v856_v33  ;;  %v1530_v42 = vadd.f32 %v1529_v36, %v1528_v29  ;;  %v1012_v43 = vadd.f32 %v1011_v38, %v851_v34  ;;  %v1198_v0 = vadd.f32 %v1197_v52, %v1167_v58 }
 0x16c   : > { %v1531_v46 = vpop.f32.mrf.mxu0  ;;  %v1637_v49 = vpop.f32.mrf.mxu1  ;;  %v1130_v7 = vadd.f32 %v1129_v62, %v1009_v28 }
 0x16d   : > { %1101 = vst [vmem:[%s2221_s25 + $0x70] sm:$0xff] %v1017_v40  ;;  %v859_v51 = vadd.f32 %v1530_v42, %v2217_v48  ;;  %1100 = vst [vmem:[%s2221_s25 + $0x68] sm:$0xff] %v1012_v43  ;;  %v1199_v9 = vadd.f32 %v1198_v0, %v1168_v3  ;;  %v1169_v10 = vmul.f32 %v1012_v43, %v1012_v43 }
 0x16e   : > { %v1532_v53 = vpop.f32.mrf.mxu0  ;;  %v1024_v55 = vpop.f32.mrf.mxu1  ;;  %v1131_v18 = vadd.f32 %v1130_v7, %v1012_v43  ;;  %v1170_v28 = vmul.f32 %v1017_v40, %v1017_v40  ;;  %v896_v43 = vadd.f32 %v2193_v12, %v2217_v48 }
 0x16f   : > { %v1020_v56 = vadd.f32 %v1634_v30, %v859_v51  ;;  %v1533_v57 = vadd.f32 %v1532_v53, %v1531_v46  ;;  %v1200_v20 = vadd.f32 %v1199_v9, %v1169_v10  ;;  %v907_v46 = vadd.f32 %v2199_v27, %v2217_v48 }
 0x170   : > { %v1534_v59 = vpop.f32.mrf.mxu0  ;;  %v1638_v60 = vpop.f32.mrf.mxu1  ;;  %v1132_v31 = vadd.f32 %v1131_v18, %v1017_v40  ;;  %v899_v27 = vadd.f32 %v2195_v17, %v2217_v48 }
 0x171   : > { %1102 = vst [vmem:[%s2221_s25 + $0x78] sm:$0xff] %v1020_v56  ;;  %v864_v63 = vadd.f32 %v1533_v57, %v2217_v48  ;;  %v1171_v36 = vmul.f32 %v1020_v56, %v1020_v56  ;;  %v1201_v38 = vadd.f32 %v1200_v20, %v1170_v28 }
 0x172   : > { %v1535_v1 = vpop.f32.mrf.mxu0  ;;  %v1027_v54 = vpop.f32.mrf.mxu1  ;;  %v1133_v41 = vadd.f32 %v1132_v31, %v1020_v56  ;;  %v1578_v56 = vadd.f32 %v2212_v47, %v2209_v44 }
 0x173   : > { %v1025_v2 = vadd.f32 %v1024_v55, %v864_v63  ;;  %v1536_v61 = vadd.f32 %v1535_v1, %v1534_v59  ;;  %v1202_v53 = vadd.f32 %v1201_v38, %v1171_v36  ;;  %v920_v59 = vadd.f32 %v1575_v35, %v2217_v48 }
 0x174   : > { %v1537_v5 = vpop.f32.mrf.mxu0  ;;  %v2254_v6 = vpop.f32.mrf.mxu1 }
 0x175   : > { %1103 = vst [vmem:[%s2221_s25 + $0x80] sm:$0xff] %v1025_v2  ;;  %v867_v8 = vadd.f32 %v1536_v61, %v2217_v48 }
 0x176   : > { %v1538_v4 = vpop.f32.mrf.mxu0  ;;  %v1040_v11 = vpop.f32.mrf.mxu1 }
 0x177   : > { %v1028_v14 = vadd.f32 %v1027_v54, %v867_v8  ;;  %v1539_v15 = vadd.f32 %v1538_v4, %v1537_v5  ;;  %v912_v8 = vadd.f32 %v2201_v32, %v2217_v48 }
 0x178   : > { %v1540_v16 = vpop.f32.mrf.mxu0  ;;  %v2258_v13 = vpop.f32.mrf.mxu1 }
 0x179   : > { %1104 = vst [vmem:[%s2221_s25 + $0x88] sm:$0xff] %v1028_v14  ;;  %v872_v19 = vadd.f32 %v1539_v15, %v2217_v48  ;;  %v1173_v55 = vmul.f32 %v1028_v14, %v1028_v14 }
 0x17a   : > { %v1541_v21 = vpop.f32.mrf.mxu0  ;;  %v1043_v23 = vpop.f32.mrf.mxu1 }
 0x17b   : > { %v1033_v24 = vadd.f32 %v1637_v49, %v872_v19  ;;  %v1542_v25 = vadd.f32 %v1541_v21, %v1540_v16  ;;  %v1172_v49 = vmul.f32 %v1025_v2, %v1025_v2 }
 0x17c   : > { %v1543_v29 = vpop.f32.mrf.mxu0  ;;  %v1645_v30 = vpop.f32.mrf.mxu1 }
 0x17d   : > { %1105 = vst [vmem:[%s2221_s25 + $0x90] sm:$0xff] %v1033_v24  ;;  %v875_v33 = vadd.f32 %v1542_v25, %v2217_v48  ;;  %v2266_v34 = vadd.f32 %v1645_v30, %v904_v26  ;;  %v1203_v0 = vadd.f32 %v1202_v53, %v1172_v49  ;;  %v1174_v1 = vmul.f32 %v1033_v24, %v1033_v24 }
 0x17e   : > { %v1544_v42 = vpop.f32.mrf.mxu0  ;;  %v1056_v22 = vpop.f32.mrf.mxu1  ;;  %v915_v26 = vadd.f32 %v2203_v37, %v2217_v48 }
 0x17f   : > { %v1036_v45 = vadd.f32 %v1638_v60, %v875_v33  ;;  %1113 = vst [vmem:[%s2221_s25 + $0xd0] sm:$0xff] %v2266_v34  ;;  %v1545_v40 = vadd.f32 %v1544_v42, %v1543_v29  ;;  %v2276_v50 = vadd.f32 %v1056_v22, %v896_v43  ;;  %v1134_v60 = vadd.f32 %v1133_v41, %v1025_v2 }
 0x180   : > { %v1546_v51 = vpop.f32.mrf.mxu0  ;;  %v1646_v39 = vpop.f32.mrf.mxu1  ;;  %v1204_v44 = vadd.f32 %v1203_v0, %v1173_v55 }
 0x181   : > { %1106 = vst [vmem:[%s2221_s25 + $0x98] sm:$0xff] %v1036_v45  ;;  %v880_v52 = vadd.f32 %v1545_v40, %v2217_v48  ;;  %v2280_v12 = vadd.f32 %v1646_v39, %v907_v46  ;;  %1111 = vst [vmem:[%s2221_s25 + $0xc0] sm:$0xff] %v2276_v50  ;;  %v1135_v17 = vadd.f32 %v1134_v60, %v1028_v14 }
 0x182   : > { %v1547_v57 = vpop.f32.mrf.mxu0  ;;  %v1059_v58 = vpop.f32.mrf.mxu1  ;;  %v1175_v47 = vmul.f32 %v1036_v45, %v1036_v45  ;;  %v923_v14 = vadd.f32 %v1578_v56, %v2217_v48  ;;  %v1205_v15 = vadd.f32 %v1204_v44, %v1174_v1 }
 0x183   : > { %v1041_v62 = vadd.f32 %v1040_v11, %v880_v52  ;;  %1114 = vst [vmem:[%s2221_s25 + $0xd8] sm:$0xff] %v2280_v12  ;;  %v1548_v63 = vadd.f32 %v1547_v57, %v1546_v51  ;;  %v2291_v54 = vadd.f32 %v1059_v58, %v899_v27  ;;  %v1136_v10 = vadd.f32 %v1135_v17, %v1033_v24 }
 0x184   : > { %v1549_v61 = vpop.f32.mrf.mxu0  ;;  %v1649_v3 = vpop.f32.mrf.mxu1 }
 0x185   : > { %1107 = vst [vmem:[%s2221_s25 + $0xa0] sm:$0xff] %v1041_v62  ;;  %v883_v5 = vadd.f32 %v1548_v63, %v2217_v48  ;;  %v2295_v7 = vadd.f32 %v1649_v3, %v920_v59  ;;  %1112 = vst [vmem:[%s2221_s25 + $0xc8] sm:$0xff] %v2291_v54  ;;  %v1137_v20 = vadd.f32 %v1136_v10, %v1036_v45 }
 0x186   : > { %v1550_v2 = vpop.f32.mrf.mxu0  ;;  %v1072_v9 = vpop.f32.mrf.mxu1  ;;  %v1176_v21 = vmul.f32 %v1041_v62, %v1041_v62 }
 0x187   : > { %v1044_v4 = vadd.f32 %v1043_v23, %v883_v5  ;;  %1117 = vst [vmem:[%s2221_s25 + $0xf0] sm:$0xff] %v2295_v7  ;;  %v1551_v11 = vadd.f32 %v1550_v2, %v1549_v61  ;;  %v2304_v16 = vadd.f32 %v1072_v9, %v912_v8  ;;  %v1206_v23 = vadd.f32 %v1205_v15, %v1175_v47 }
 0x188   : > { %v1552_v18 = vpop.f32.mrf.mxu0  ;;  %v1650_v19 = vpop.f32.mrf.mxu1  ;;  %v1138_v29 = vadd.f32 %v1137_v20, %v1041_v62 }
 0x189   : > { %1108 = vst [vmem:[%s2221_s25 + $0xa8] sm:$0xff] %v1044_v4  ;;  %v888_v32 = vadd.f32 %v1551_v11, %v2217_v48  ;;  %v2308_v24 = vadd.f32 %v1650_v19, %v923_v14  ;;  %1115 = vst [vmem:[%s2221_s25 + $0xe0] sm:$0xff] %v2304_v16  ;;  %v1177_v30 = vmul.f32 %v1044_v4, %v1044_v4 }
 0x18a   : > { %v1553_v25 = vpop.f32.mrf.mxu0  ;;  %v1075_v28 = vpop.f32.mrf.mxu1  ;;  %v1207_v36 = vadd.f32 %v1206_v23, %v1176_v21  ;;  %v1139_v38 = vadd.f32 %v1138_v29, %v1044_v4 }
 0x18b   : > { %v1049_v31 = vadd.f32 %v2254_v6, %v888_v32  ;;  %1118 = vst [vmem:[%s2221_s25 + $0xf8] sm:$0xff] %v2308_v24  ;;  %v1554_v33 = vadd.f32 %v1553_v25, %v1552_v18  ;;  %v1076_v35 = vadd.f32 %v1075_v28, %v915_v26 }
 0x18c   : > { %v1208_v6 = vadd.f32 %v1207_v36, %v1177_v30 }
 0x18d   : > { %1109 = vst [vmem:[%s2221_s25 + $0xb0] sm:$0xff] %v1049_v31  ;;  %v1178_v42 = vmul.f32 %v1049_v31, %v1049_v31  ;;  %v891_v37 = vadd.f32 %v1554_v33, %v2217_v48  ;;  %1116 = vst [vmem:[%s2221_s25 + $0xe8] sm:$0xff] %v1076_v35  ;;  %v1140_v43 = vadd.f32 %v1139_v38, %v1049_v31 }
 0x18f   : > { %v1052_v22 = vadd.f32 %v2258_v13, %v891_v37  ;;  %v1209_v45 = vadd.f32 %v1208_v6, %v1178_v42 }
 0x191   : > { %1110 = vst [vmem:[%s2221_s25 + $0xb8] sm:$0xff] %v1052_v22  ;;  %v1141_v40 = vadd.f32 %v1140_v43, %v1052_v22  ;;  %v1179_v46 = vmul.f32 %v1052_v22, %v1052_v22 }
 0x192   : > { %1893 = shalt.err (!%p1890_p0)
}
 0x193   : > { %s1894_s7 = scalar_lea.hbm %s2325_s13, 4096  ;;  %s1898_s23 = scalar_lea.hbm %s2420_s3, 8192 }
 0x194   : > { %p1895_p5 = scmp.ne.s32.totalorder %s2325_s13, %s1894_s7  ;;  %p1899_p4 = scmp.lt.s32.totalorder %s2325_s13, %s2420_s3 }
 0x195   : > { %p1900_p6 = scmp.lt.s32.totalorder %s1898_s23, %s1894_s7 }
 0x196   : > { %p1896_p9 = pnand %p1895_p5, %p2437_p11 }
 0x197   : > { %p1901_p8 = por %p1900_p6, %p1899_p4 }
 0x198   : > { %p1897_p1 = pneg %p1896_p9 }
 0x19a   : > { %p1902_p3 = pnand %p1901_p8, %p1897_p1 }
 0x19c   : > { %1905 = shalt.err (!%p1902_p3)
}
 0x19d   : > { %s1987_s28 = smov 128   ;;  %s1988_s12 = smov 8   ;;  %v1180_v48 = vmul.f32 %v2276_v50, %v2276_v50  ;;  %v1142_v13 = vadd.f32 %v1141_v40, %v2276_v50  ;;  %v1210_v49 = vadd.f32 %v1209_v45, %v1179_v46  ;;  %v1181_v51 = vmul.f32 %v2291_v54, %v2291_v54 }
 0x19e   : > { %1676 = dma.vmem_to_hbm [thread:$0]  (%p2437_p11), %s2327_s29, 4096, %s2325_s13, %s1229_s14, %s1987_s28, %s1987_s28, %s1988_s12   ;;  %v1182_v52 = vmul.f32 %v2266_v34, %v2266_v34  ;;  %v1183_v57 = vmul.f32 %v2280_v12, %v2280_v12  ;;  %v1184_v50 = vmul.f32 %v2304_v16, %v2304_v16  ;;  %v1185_v62 = vmul.f32 %v1076_v35, %v1076_v35 }
 0x19f   : > { %v1211_v39 = vadd.f32 %v1210_v49, %v1180_v48  ;;  %v1143_v41 = vadd.f32 %v1142_v13, %v2291_v54  ;;  %s1385_s29 = sshll.u32 %s2131_s5, 1  ;;  %s1463_s11 = sshll.u32 %s2036_s19, 5  ;;  %vm1225_vm0 = vcmask 1040384  }
 0x1a0   : > { %s242_s13 = scalar_lea.vmem [#allocation8], %s1385_s29  ;;  %s2380_s30 = scalar_lea.hbm %s2421_s4, %s1463_s11 }
 0x1a1   : > { %v1144_v53 = vadd.f32 %v1143_v41, %v2266_v34  ;;  %v1212_v55 = vadd.f32 %v1211_v39, %v1181_v51  ;;  %v1186_v34 = vmul.f32 %v2295_v7, %v2295_v7  ;;  %s1263_s14 = sshll.u32 %s242_s13, 4  ;;  %s1234_s6 = scalar_lea.sflag [#allocation9], %s2131_s5  ;;  %s1264_s14 = int_to_ptr.vmem [resolvable:$true] %s1263_s14 }
 0x1a2   : > { %s1906_s7 = scalar_lea.vmem %s1264_s14, 32  ;;  %s1989_s19 = smov [#allocation8]  }
 0x1a3   : > { %v1145_v27 = vadd.f32 %v1144_v53, %v2280_v12  ;;  %v1213_v58 = vadd.f32 %v1212_v55, %v1182_v52  ;;  %v1187_v12 = vmul.f32 %v2308_v24, %v2308_v24  ;;  %p1907_p7 = scmp.ne.s32.totalorder %s1264_s14, %s1906_s7  ;;  %s1910_s8 = sshll.u32 %s1989_s19, 4  ;;  %s1911_s8 = int_to_ptr.vmem [resolvable:$false] %s1910_s8 }
 0x1a4   : > { %s1912_s21 = scalar_lea.vmem %s1911_s8, 64  ;;  %p1913_p2 = scmp.lt.s32.totalorder %s1264_s14, %s1911_s8 }
 0x1a5   : > { %v1146_v59 = vadd.f32 %v1145_v27, %v2304_v16  ;;  %v1214_v56 = vadd.f32 %v1213_v58, %v1183_v57  ;;  %p1908_p12 = pnand %p1907_p7, %p2437_p11  ;;  %p1914_p13 = scmp.lt.s32.totalorder %s1912_s21, %s1906_s7 }
 0x1a7   : > { %v1147_v60 = vadd.f32 %v1146_v59, %v1076_v35  ;;  %v1215_v63 = vadd.f32 %v1214_v56, %v1184_v50  ;;  %p1909_p10 = pneg %p1908_p12  ;;  %p1915_p0 = por %p1914_p13, %p1913_p2 }
 0x1a9   : > { %v1148_v0 = vadd.f32 %v1147_v60, %v2295_v7  ;;  %v1216_v1 = vadd.f32 %v1215_v63, %v1185_v62  ;;  %p1916_p5 = pnand %p1915_p0, %p1909_p10 }
 0x1ab   : > { %v1149_v54 = vadd.f32 %v1148_v0, %v2308_v24  ;;  %v1217_v61 = vadd.f32 %v1216_v1, %v1186_v34 }
 0x1ad   : > { %v1150_v3 = vrot.slane %v1149_v54, 4  ;;  %v1218_v17 = vadd.f32 %v1217_v61, %v1187_v12 }
 0x1af   : > { %v1151_v5 = vadd.f32 %v1150_v3, %v1149_v54  ;;  %v1219_v44 = vrot.slane %v1218_v17, 4 }
 0x1b1   : > { %v1152_v47 = vrot.slane %v1151_v5, 2  ;;  %v1220_v2 = vadd.f32 %v1219_v44, %v1218_v17 }
 0x1b3   : > { %v1153_v8 = vadd.f32 %v1152_v47, %v1151_v5  ;;  %v1221_v9 = vrot.slane %v1220_v2, 2 }
 0x1b5   : > { %v1154_v10 = vrot.slane %v1153_v8, 1  ;;  %v1222_v7 = vadd.f32 %v1221_v9, %v1220_v2 }
 0x1b7   : > { %v1223_v4 = vrot.slane %v1222_v7, 1  ;;  %v1155_v11 = vadd.f32 %v1154_v10, %v1153_v8 }
 0x1b9   : > { %v1224_v14 = vadd.f32 %v1223_v4, %v1222_v7 }
 0x1bb   : > { %v1226_v15 = vsel %vm1225_vm0, %v1155_v11, %v1224_v14 }
 0x1bc   : > { %1227 = vst [vmem:[%s242_s13] sm:$0x3] %v1226_v15 }
 0x1bd   : > { %1919 = shalt.err (!%p1916_p5)
}
 0x1be   : > { %s1920_s23 = scalar_lea.hbm %s2380_s30, 32  ;;  %s1924_s25 = scalar_lea.hbm %s2421_s4, 64 }
 0x1bf   : > { %p1921_p9 = scmp.ne.s32.totalorder %s2380_s30, %s1920_s23  ;;  %p1925_p6 = scmp.lt.s32.totalorder %s2380_s30, %s2421_s4 }
 0x1c0   : > { %p1926_p8 = scmp.lt.s32.totalorder %s1924_s25, %s1920_s23 }
 0x1c1   : > { %p1922_p1 = pnand %p1921_p9, %p2437_p11 }
 0x1c2   : > { %p1927_p3 = por %p1926_p8, %p1925_p6 }
 0x1c3   : > { %p1923_p4 = pneg %p1922_p1 }
 0x1c5   : > { %p1928_p7 = pnand %p1927_p3, %p1923_p4 }
 0x1c7   : > { %1931 = shalt.err (!%p1928_p7)
}
 0x1c8   : > { %1677 = dma.vmem_to_hbm [thread:$0]  (%p2437_p11), %s1264_s14, 32, %s2380_s30, %s1234_s6  }
 0x1c9 PF: > { %s1275_s29 = sand.u32 1, %s1966_s15   ;;  %p2438_p12 = scmp.ne.s32.totalorder %s2427_s22, 0 }
 0x1ca   : > { %p2439_p10 = scmp.ge.s32.totalorder %s1978_s18, 2  ;;  %s1276_s11 = scalar_lea.sflag [#allocation4], %s1275_s29 }
 0x1cc   : > { %p1689_p2 = pnand %p2439_p10, %p2438_p12 }
 0x1ce   : > { %p1690_p13 = pneg %p1689_p2 }
 0x1d0   : > { %1957 = dma.done.wait (%p1690_p13), %s1276_s11, 4096  }
 0x1d1   : > { %1959 = vsyncadd (%p1690_p13), %s1276_s11, 4294963200  ;;  %s1285_s13 = scalar_lea.sflag [#allocation9], %s1275_s29 }
 0x1d2   : > { %1961 = dma.done.wait (%p1690_p13), %s1285_s13, 32  }
 0x1d3   : > { %1963 = vsyncadd (%p1690_p13), %s1285_s13, 4294967264  ;;  %p22_p11 = scmp.ge.s32.totalorder %s2069_s27, 4   ;;  %s2440_s15 = smov %s1970_s16 }
 0x1d4   : > { %s2441_s16 = smov %s1974_s17  ;;  %s2442_s17 = smov %s2086_s9 }
 0x1d5   : > { %s2443_s18 = smov %s2069_s27  ;;  %24 = sbr.rel (!%p22_p11) target bundleno = 8 (0x8), region = 98 }
 0x1da   :  { %1290 = vsyncpa [#allocation3], 1 }
 0x1db   :  { %1292 = vsyncpa [#allocation3 + $0x1], 1 }
 0x1dc   :  { %1293 = vsyncpa [#allocation6], 1 }
 0x1dd   :  { %1294 = vsyncpa [#allocation4], 1 }
 0x1de   :  { %1296 = vsyncpa [#allocation4 + $0x1], 1 }
 0x1df   :  { %1297 = vsyncpa [#allocation9], 1 }
 0x1e0   :  { %1299 = vsyncpa [#allocation9 + $0x1], 1 }

</bundles_post_ra>
